<compile_context>
chip_gen: v7x
topology: tpu7x:2x2x1
jax: 0.10.0
libtpu: 0.0.40
codegen_flags: <defaults>
</compile_context>

<pallas_src>
import functools

import jax
import jax.numpy as jnp
from jax.experimental import pallas as pl
from jax.experimental.pallas import tpu as pltpu

_LANE = 128
_SUBLANE = 8
_MAX_IDX_CHUNK = 32768        # bound scalar-prefetch SMEM usage (4B/idx, pow2-padded)


def _round_up(x, m):
    return (x + m - 1) // m * m


def _tpu_vmem_capacity_bytes():
    """Physical VMEM per TensorCore; conservative fallback if unavailable."""
    try:
        info = pltpu.get_tpu_info()
        cap = getattr(info, "vmem_capacity_bytes", None)
        if cap:
            return int(cap)
    except Exception:
        pass
    return 64 * 1024 * 1024   # v7x-sized fallback (smallest of v5e/v6e/v7x)


# ---------------------------------------------------------------------------
# Shared gather helper: tq concurrent row DMAs straight into the output block.
# ---------------------------------------------------------------------------
def _gather_rows(src_ref, idx_ref, base, tq, out_ref, sem):
    # Issue all tq row copies (kept in flight together -> latency amortized
    # over the whole block), then drain them.  A single DMA semaphore is
    # shared; every copy has an identical (1, ed_p) transfer size, so waiting
    # tq times with the same-shaped descriptor retires all of them.
    @pl.loop(0, tq)
    def _issue(j):
        rid = idx_ref[base + j]
        pltpu.make_async_copy(
            src_ref.at[pl.ds(rid, 1), :],
            out_ref.at[pl.ds(j, 1), :],
            sem,
        ).start()

    @pl.loop(0, tq)
    def _drain(j):
        rid = idx_ref[base + j]
        pltpu.make_async_copy(
            src_ref.at[pl.ds(rid, 1), :],
            out_ref.at[pl.ds(j, 1), :],
            sem,
        ).wait()


# ---------------------------------------------------------------------------
# Path B: table stays in HBM; rows DMA'd straight HBM -> output block.
# ---------------------------------------------------------------------------
def _gather_hbm_kernel(tq, idx_ref, w_hbm, out_ref, sem):
    base = pl.program_id(0) * tq
    _gather_rows(w_hbm, idx_ref, base, tq, out_ref, sem)


# ---------------------------------------------------------------------------
# Path A: table copied ONCE into a single-buffered VMEM scratch, then gathered
# with local VMEM -> VMEM row DMAs (no masked vector stores, no vregs used).
# Requires a sequential grid ("arbitrary") so step 0 runs before the rest.
# ---------------------------------------------------------------------------
def _gather_resident_kernel(tq, idx_ref, w_hbm, out_ref, table_vmem, sem):
    @pl.when(pl.program_id(0) == 0)
    def _():
        pltpu.sync_copy(w_hbm, table_vmem)     # one full-bandwidth table DMA

    base = pl.program_id(0) * tq
    _gather_rows(table_vmem, idx_ref, base, tq, out_ref, sem)


def _lookup_chunk(weight, idx, tq, force_dma):
    num_p, ed_p = weight.shape
    dsize = jnp.dtype(weight.dtype).itemsize
    row_bytes = ed_p * dsize
    L = int(idx.shape[0])

    # Rows per grid step: target ~256 KiB of output per step (amortizes the
    # ~0.35us/step overhead), but keep >=2 grid steps when L allows so the
    # "parallel" grid axis actually balances across TCs on v7x.
    if tq is None:
        tq = max(_SUBLANE, min(512, (256 * 1024) // row_bytes))
    tq = min(tq, max(_SUBLANE, _round_up((L + 1) // 2, _SUBLANE)))
    tq = max(_SUBLANE, _round_up(tq, _SUBLANE))

    L_p = _round_up(max(L, tq), tq)
    if L_p != L:
        idx = jnp.pad(idx, (0, L_p - L))          # pad with padding_idx 0
    grid = (L_p // tq,)

    table_bytes = num_p * ed_p * dsize
    out_block_bytes = tq * ed_p * dsize
    gathered_bytes = L_p * row_bytes
    cap = _tpu_vmem_capacity_bytes()

    # Resident fast path: single-buffered table + double-buffered output blocks
    # must fit ~0.7 * VMEM, and copying the whole table must be worth it
    # relative to the bytes actually gathered.
    resident_need = table_bytes + 2 * out_block_bytes + (1 << 20)
    resident_ok = (
        (not force_dma)
        and resident_need <= int(0.7 * cap)
        and table_bytes <= max(4 * gathered_bytes, 8 << 20)
    )

    out_shape = jax.ShapeDtypeStruct((L_p, ed_p), weight.dtype)
    out_spec = pl.BlockSpec((tq, ed_p), lambda i, idx_ref: (i, 0))
    in_specs = [pl.BlockSpec(memory_space=pl.ANY)]   # table stays in HBM

    if resident_ok:
        kernel = functools.partial(_gather_resident_kernel, tq)
        scratch_shapes = (
            pltpu.VMEM((num_p, ed_p), weight.dtype),  # single-buffered table
            pltpu.SemaphoreType.DMA,                  # one shared DMA semaphore
        )
        semantics = ("arbitrary",)   # one-time table load needs sequential grid
        need = table_bytes + 2 * out_block_bytes
    else:
        kernel = functools.partial(_gather_hbm_kernel, tq)
        scratch_shapes = (pltpu.SemaphoreType.DMA,)
        semantics = ("parallel",)    # independent steps -> both TCs on v7x
        need = 2 * out_block_bytes

    vmem_limit = int(min(int(0.9 * cap), max(need + (4 << 20), 16 << 20)))

    out = pl.pallas_call(
        kernel,
        out_shape=out_shape,
        grid_spec=pltpu.PrefetchScalarGridSpec(
            num_scalar_prefetch=1,
            grid=grid,
            in_specs=in_specs,
            out_specs=out_spec,
            scratch_shapes=scratch_shapes,
        ),
        compiler_params=pltpu.CompilerParams(
            dimension_semantics=semantics,
            vmem_limit_bytes=vmem_limit,
        ),
    )(idx, weight)
    return out[:L]


def common_embedding_lookup(weight, idx, *, tq=None, force_dma=False):
    """Gather rows `idx` from padded `weight` on TPU via Pallas.

    `weight` must already be padded so weight.shape[1] % 128 == 0 and
    weight.shape[0] % 8 == 0.  Returns (len(idx), weight.shape[1]).
    """
    num_p, ed_p = weight.shape
    assert ed_p % _LANE == 0 and num_p % _SUBLANE == 0
    idx = jnp.clip(jnp.asarray(idx, jnp.int32).reshape(-1), 0, num_p - 1)
    L = int(idx.shape[0])
    if L <= _MAX_IDX_CHUNK:
        return _lookup_chunk(weight, idx, tq, force_dma)
    # Chunk very long index lists so the scalar-prefetch SMEM array stays small.
    parts = [
        _lookup_chunk(weight, idx[s:s + _MAX_IDX_CHUNK], tq, force_dma)
        for s in range(0, L, _MAX_IDX_CHUNK)
    ]
    return jnp.concatenate(parts, axis=0)


class CommonEmbedding:
    """JAX/Pallas port of the PyTorch CommonEmbedding (nn.Embedding, padding_idx=0)."""

    # Below this many gathered elements, XLA's fused gather beats the
    # pallas_call launch + grid overhead.
    _TINY_GATHER_ELEMS = 1 << 16

    def __init__(self, num, embed_dim, key):
        self.num = int(num)
        self.embed_dim = int(embed_dim)
        # nn.Embedding default init: N(0, 1); padding_idx=0 row zeroed.
        w = jax.random.normal(key, (self.num, self.embed_dim), dtype=jnp.float32)
        w = w.at[0].set(0.0)
        # Pad ONCE at init to TPU-friendly (sublane, lane) multiples; padded
        # rows/cols are zero and sliced away on output.
        num_p = _round_up(self.num, _SUBLANE)
        ed_p = _round_up(self.embed_dim, _LANE)
        self.weight_padded = (
            jnp.zeros((num_p, ed_p), jnp.float32)
            .at[: self.num, : self.embed_dim]
            .set(w)
        )

    @property
    def weight(self):
        return self.weight_padded[: self.num, : self.embed_dim]

    def forward(self, idx_list, *, force_pallas=True, force_dma=False):
        # torch.LongTensor([idx_list]) -> (1, L); embedding -> (1, L, embed_dim)
        idx = jnp.asarray(idx_list, dtype=jnp.int32).reshape(-1)
        idx = jnp.clip(idx, 0, self.num - 1)
        L = int(idx.shape[0])
        if (not force_pallas) and L * self.embed_dim < self._TINY_GATHER_ELEMS:
            out = jnp.take(self.weight, idx, axis=0)
        else:
            out = common_embedding_lookup(self.weight_padded, idx, force_dma=force_dma)
            out = out[:, : self.embed_dim]
        return out[None, :, :]


if __name__ == "__main__":
    key = jax.random.PRNGKey(0)

    num_embeddings = 500   # not a multiple of 8  -> exercises row padding
    embed_dim = 96         # not a multiple of 128 -> exercises column padding
    module = CommonEmbedding(num_embeddings, embed_dim, key)

    # Small deterministic index list: includes padding index 0, the max index,
    # and a length that is NOT a multiple of the per-step batch (exercises L padding).
    idx_list = [0, 3, 5, 7, 1, 2, 0, 9, 499, 42, 17, 0, 255]   # L = 13

    # Reference: plain XLA gather.
    ref = jnp.take(module.weight, jnp.asarray(idx_list, dtype=jnp.int32), axis=0)[None]

    # Path A: table resident in VMEM (default for small vocabularies).
    out_a = jax.block_until_ready(module.forward(idx_list))
    # Path B: row DMAs straight from HBM into the output block (large-table path).
    out_b = jax.block_until_ready(module.forward(idx_list, force_dma=True))

    for out in (out_a, out_b):
        assert out.shape == (1, len(idx_list), embed_dim), out.shape
        assert out.dtype == jnp.float32
        assert jnp.allclose(out, ref), "mismatch vs reference gather"
        # padding_idx=0 rows must be exactly zero
        assert jnp.all(out[0, 0] == 0.0) and jnp.all(out[0, 6] == 0.0)

    print("KERNEL_OK")
</pallas_src>

<mosaic_0001>
module attributes {stable_mosaic.version = 11 : i64} {
  func.func @_gather_resident_kernel(%arg0: i32, %arg1: memref<16xi32, #tpu.memory_space<smem>>, %arg2: memref<504x128xf32, #tpu.memory_space<any>>, %arg3: memref<8x128xf32, #tpu.memory_space<vmem>>, %arg4: memref<504x128xf32, #tpu.memory_space<vmem>>, %arg5: memref<!tpu.dma_semaphore, #tpu.memory_space<semaphore_mem>>) attributes {dimension_semantics = [#tpu.dimension_semantics<arbitrary>], iteration_bounds = array<i64: 2>, scalar_prefetch = 1 : i64, scratch_operands = 2 : i64, tpu.core_type = #tpu.core_type<tc>, window_params = [{}, {transform_indices = @transform_1, window_bounds = array<i64: 8, 128>}]} {
    %c0_i32 = arith.constant 0 : i32
    %0 = arith.cmpi eq, %arg0, %c0_i32 : i32
    %1 = arith.extui %0 : i1 to i32
    %c0_i32_0 = arith.constant 0 : i32
    %2 = arith.cmpi ne, %1, %c0_i32_0 : i32
    scf.if %2 {
      "tpu.region"() ({
        %6 = tpu.sem_alloc : memref<!tpu.dma_semaphore, #tpu.memory_space<semaphore_mem>>
        tpu.enqueue_dma source(%arg2 : memref<504x128xf32, #tpu.memory_space<any>>) target(%arg4 : memref<504x128xf32, #tpu.memory_space<vmem>>) target_semaphore(%6 : memref<!tpu.dma_semaphore, #tpu.memory_space<semaphore_mem>>)
        tpu.wait_dma2 semaphore(%6 : memref<!tpu.dma_semaphore, #tpu.memory_space<semaphore_mem>>) src(%arg2 : memref<504x128xf32, #tpu.memory_space<any>>) dst(%arg4 : memref<504x128xf32, #tpu.memory_space<vmem>>)
        tpu.yield
      }) : () -> ()
    } else {
    }
    %c8_i32 = arith.constant 8 : i32
    %3 = arith.muli %arg0, %c8_i32 : i32
    %c0_i32_1 = arith.constant 0 : i32
    %c8_i32_2 = arith.constant 8 : i32
    %4 = arith.addi %c0_i32_1, %c8_i32_2 : i32
    %c1_i32 = arith.constant 1 : i32
    scf.for %arg6 = %c0_i32_1 to %4 step %c1_i32  : i32 {
      %c1_i32_8 = arith.constant 1 : i32
      %6 = arith.muli %arg6, %c1_i32_8 : i32
      %c0_i32_9 = arith.constant 0 : i32
      %7 = arith.addi %c0_i32_9, %6 : i32
      %8 = arith.addi %3, %7 : i32
      %9 = arith.index_cast %8 : i32 to index
      %10 = memref.load %arg1[%9] : memref<16xi32, #tpu.memory_space<smem>>
      %c0_i32_10 = arith.constant 0 : i32
      %11 = tpu.memref_slice %arg4[%10, %c0_i32_10] : memref<504x128xf32, #tpu.memory_space<vmem>> -> memref<1x128xf32, #tpu.memory_space<vmem>>
      %c0_i32_11 = arith.constant 0 : i32
      %12 = tpu.memref_slice %arg3[%7, %c0_i32_11] : memref<8x128xf32, #tpu.memory_space<vmem>> -> memref<1x128xf32, #tpu.memory_space<vmem>>
      tpu.enqueue_dma source(%11 : memref<1x128xf32, #tpu.memory_space<vmem>>) target(%12 : memref<1x128xf32, #tpu.memory_space<vmem>>) target_semaphore(%arg5 : memref<!tpu.dma_semaphore, #tpu.memory_space<semaphore_mem>>)
    }
    %c8_i32_3 = arith.constant 8 : i32
    %c0_i32_4 = arith.constant 0 : i32
    %c8_i32_5 = arith.constant 8 : i32
    %5 = arith.addi %c0_i32_4, %c8_i32_5 : i32
    %c1_i32_6 = arith.constant 1 : i32
    scf.for %arg6 = %c0_i32_4 to %5 step %c1_i32_6  : i32 {
      %c1_i32_8 = arith.constant 1 : i32
      %6 = arith.muli %arg6, %c1_i32_8 : i32
      %c0_i32_9 = arith.constant 0 : i32
      %7 = arith.addi %c0_i32_9, %6 : i32
      %8 = arith.addi %3, %7 : i32
      %9 = arith.index_cast %8 : i32 to index
      %10 = memref.load %arg1[%9] : memref<16xi32, #tpu.memory_space<smem>>
      %c0_i32_10 = arith.constant 0 : i32
      %11 = tpu.memref_slice %arg4[%10, %c0_i32_10] : memref<504x128xf32, #tpu.memory_space<vmem>> -> memref<1x128xf32, #tpu.memory_space<vmem>>
      %c0_i32_11 = arith.constant 0 : i32
      %12 = tpu.memref_slice %arg3[%7, %c0_i32_11] : memref<8x128xf32, #tpu.memory_space<vmem>> -> memref<1x128xf32, #tpu.memory_space<vmem>>
      tpu.wait_dma2 semaphore(%arg5 : memref<!tpu.dma_semaphore, #tpu.memory_space<semaphore_mem>>) src(%11 : memref<1x128xf32, #tpu.memory_space<vmem>>) dst(%12 : memref<1x128xf32, #tpu.memory_space<vmem>>)
    }
    %c8_i32_7 = arith.constant 8 : i32
    return
  }
  func.func @transform_1(%arg0: i32, %arg1: memref<16xi32, #tpu.memory_space<smem>>) -> (i32, i32) {
    %c0_i32 = arith.constant 0 : i32
    %c0_i32_0 = arith.constant 0 : i32
    return %arg0, %c0_i32 : i32, i32
  }
}

</mosaic_0001>

<bundles_post_ra>
// kernel: tpu_custom_call.1
= control target key start
LH: loop header
LB: loop body
LE: loop exit
PB: predicated region body
PF: predicated region fallthrough
CT: control target
= control target key end

     0   :  { %s521_s0 = inlined_call_operand.hbm [shape: s32[16], index: 0, kind: input, shape index: {}]   ;;  %s522_s1 = inlined_call_operand.hbm [shape: f32[504,128], index: 1, kind: input, shape index: {}]   ;;  %s523_s2 = inlined_call_operand.hbm [shape: f32[16,128], index: 2, kind: output, shape index: {}]  }
   0x1   :  { %s281_s11 = scalar_lea.hbm %s521_s0, 16 }
   0x2   :  { %p282_p0 = scmp.ne.s32.totalorder %s521_s0, %s281_s11  ;;  %p285_p1 = scmp.lt.u32.totalorder %s281_s11, %s521_s0 }
   0x4   :  { %p287_p2 = pnand %p285_p1, %p282_p0 }
   0x6   :  { %290 = shalt.err (!%p287_p2)  }
   0x7   :  { %s391_s16 = smov [#allocation5]  }
   0x8   :  { %8 = dma.hbm_to_smem %s521_s0, 16, %s391_s16, [#allocation4] }
   0x9   :  { %361 = dma.done.wait [#allocation4], 16 }
   0xa   :  { %362 = vsyncadd [#allocation4], 4294967280 }
   0xb   :  { %10 = sfence }
   0xc   :  { %11 = vsyncpa [#allocation7], 0 }
   0xd   :  { %13 = vsyncpa [#allocation7 + $0x1], 0  ;;  %s421_s19 = smov 0   ;;  %s423_s20 = smov 0  }
   0xe   :  { %s425_s21 = smov 0  }
   0xf LB: > { %s221_s0 = sadd.s32 4294967295, %s381_s21   ;;  %s438_s22 = sadd.s32 1, %s381_s21   ;;  %s381_s21 = sphi %s425_s21, %s528_s21   ;;  %s377_s20 = sphi %s423_s20, %s527_s20   ;;  %s373_s19 = sphi %s421_s19, %s526_s19  }
  0x10   : > { %s22_s23 = ssub.s32 %s381_s21, %s438_s22  ;;  %s25_s24 = sadd.s32 1, %s377_s20 }
  0x11   : > { %p23_p3 = scmp.eq.s32.totalorder %s22_s23, 0  ;;  %p222_p4 = scmp.ne.s32.totalorder %s22_s23, 0 }
  0x12   : > { %p29_p5 = scmp.eq.s32.totalorder %s381_s21, 1  ;;  %p34_p6 = scmp.ne.s32.totalorder %s377_s20, %s373_s19 }
  0x13   : > { %s447_s25 = scalar_select %p23_p3, %s377_s20, %s25_s24  }
  0x14   : > { %p449_p7 = por %p222_p4, %p29_p5  ;;  %p35_p8 = scmp.eq.s32.totalorder %s221_s0, 1 }
  0x15   : > { %p223_p10 = scmp.ge.s32.totalorder %s381_s21, 2 }
  0x16   : > { %p453_p9 = por %p35_p8, %p34_p6  ;;  %s49_s28 = sand.u32 (!%p223_p10), 1, %s377_s20  }
  0x17   : > { %44 = sbr.rel (%p223_p10) target bundleno = 104 (0x68), region = 12  ;;  %s461_s29 = sshll.u32 (!%p223_p10), %s49_s28, 3 }
  0x18   : > { %s51_s30 = scalar_lea.vmem (!%p223_p10), [#allocation6], %s461_s29  ;;  %p225_p11 = scmp.ne.s32.totalorder (!%p223_p10), %s381_s21, 0 }
  0x1e   : > { %55 = sbr.rel (%p225_p11) target bundleno = 55 (0x37), region = 16 }
  0x25   : > { %s392_s3 = smov [#allocation2]   ;;  %s291_s7 = scalar_lea.hbm %s522_s1, 8064 }
  0x26   : > { %s63_s4 = sshll.u32 %s392_s3, 4  ;;  %p292_p12 = scmp.ne.s32.totalorder %s522_s1, %s291_s7  ;;  %s64_s4 = int_to_ptr.vmem [resolvable:$true] %s63_s4 }
  0x27   : > { %p295_p13 = scmp.lt.u32.totalorder %s291_s7, %s522_s1 }
  0x29   : > { %p297_p0 = pnand %p295_p13, %p292_p12 }
  0x2b   : > { %300 = shalt.err (!%p297_p0)  }
  0x2c   : > { %s301_s12 = scalar_lea.vmem %s64_s4, 8064  ;;  %p306_p2 = scmp.lt.s32.totalorder %s64_s4, %s64_s4 }
  0x2d   : > { %p302_p1 = scmp.ne.s32.totalorder %s64_s4, %s301_s12  ;;  %p307_p3 = scmp.lt.s32.totalorder %s301_s12, %s301_s12 }
  0x2f   : > { %p308_p4 = por %p307_p3, %p306_p2 }
  0x31   : > { %p309_p5 = pnand %p308_p4, %p302_p1 }
  0x33   : > { %312 = shalt.err (!%p309_p5)  }
  0x34   : > { %66 = dma.hbm_to_vmem [thread:$0]  %s522_s1, 8064, %s64_s4, [#allocation8] }
  0x35   : > { %363 = dma.done.wait [#allocation8], 8064 }
  0x36   : > { %364 = vsyncadd [#allocation8], 4294959232 }
  0x37 PF: > { %s226_s15 = sshll.u32 %s381_s21, 3  ;;  %s383_s16 = smov 0  }
  0x38 LB: >> { %s77_s17 = sadd.s32 %s385_s16, %s226_s15  ;;  %s80_s0 = scalar_lea.vmem %s51_s30, %s385_s16 [#allocation6]  ;;  %s385_s16 = sphi %s383_s16, %s76_s16  }
  0x39   : >> { %s78_s18 = sld [smem:[#allocation5 + %s77_s17]] }
  0x3f   : >> { %s79_s23 = scalar_lea.vmem [#allocation2], %s78_s18 }
  0x40   : >> { %v98_v0 = vld [vmem:[%s79_s23] sm:$0x1] }
  0x41   : >> { %99 = vst [vmem:[%s80_s0] sm:$0x1] %v98_v0 }
  0x42   : >> { %124 = vsyncadd [#allocation3], 16  ;;  %s76_s16 = sadd.s32 1, %s385_s16  }
  0x43   : >> { %p73_p6 = scmp.ge.s32.totalorder %s76_s16, 8  }
  0x44   : > { %s387_s24 = smov (%p73_p6), 0  }
  0x45   : > { %75 = sbr.rel (!%p73_p6) target bundleno = 56 (0x38), region = 109 }
  0x4c LB: >> { %365 = dma.done.wait [#allocation3], 16  ;;  %s389_s24 = sphi %s387_s24, %s130_s24  }
  0x4d   : >> { %366 = vsyncadd [#allocation3], 4294967280  ;;  %s130_s24 = sadd.s32 1, %s389_s24  }
  0x4e   : >> { %p127_p8 = scmp.ge.s32.totalorder %s130_s24, 8  }
  0x4f   : > { %s228_s3 = sshll.u32 (%p127_p8), %s381_s21, 7  ;;  %s150_s7 = sshll.u32 (%p127_p8), %s51_s30, 4  ;;  %s151_s7 = int_to_ptr.vmem [resolvable:$true] %s150_s7 }
  0x50   : > { %129 = sbr.rel (!%p127_p8) target bundleno = 76 (0x4c), region = 120  ;;  %s484_s6 = scalar_lea.hbm (%p127_p8), %s523_s2, %s228_s3 }
  0x51   : > { %s137_s8 = scalar_lea.sflag (%p127_p8), [#allocation7], %s49_s28  ;;  %s313_s9 = scalar_lea.vmem (%p127_p8), %s151_s7, 128 }
  0x52   : > { %p314_p10 = scmp.ne.s32.totalorder (%p127_p8), %s151_s7, %s313_s9  ;;  %s393_s10 = smov (%p127_p8), [#allocation6]  }
  0x53   : > { %s317_s11 = sshll.u32 (%p127_p8), %s393_s10, 4  ;;  %s318_s11 = int_to_ptr.vmem [resolvable:$false] %s317_s11 }
  0x54   : > { %p315_p11 = pnand (%p127_p8), %p314_p10, %p449_p7  ;;  %s319_s12 = scalar_lea.vmem (%p127_p8), %s318_s11, 256 }
  0x55   : > { %p320_p13 = scmp.lt.s32.totalorder (%p127_p8), %s151_s7, %s318_s11  ;;  %p321_p0 = scmp.lt.s32.totalorder (%p127_p8), %s319_s12, %s313_s9 }
  0x56   : > { %p316_p12 = pneg (%p127_p8), %p315_p11 }
  0x57   : > { %p322_p1 = por %p321_p0, %p320_p13 }
  0x59   : > { %p323_p2 = pnand %p322_p1, %p316_p12 }
  0x5b   : > { %326 = shalt.err (!%p323_p2)
}
  0x5c   : > { %s327_s28 = scalar_lea.hbm %s484_s6, 128  ;;  %s331_s13 = scalar_lea.hbm %s523_s2, 256 }
  0x5d   : > { %p328_p3 = scmp.ne.s32.totalorder %s484_s6, %s327_s28  ;;  %p332_p6 = scmp.lt.u32.totalorder %s484_s6, %s523_s2 }
  0x5e   : > { %p333_p8 = scmp.lt.u32.totalorder %s331_s13, %s327_s28  ;;  %p335_p11 = scmp.lt.u32.totalorder %s327_s28, %s484_s6 }
  0x5f   : > { %p329_p4 = pnand %p328_p3, %p449_p7 }
  0x60   : > { %p334_p10 = por %p333_p8, %p332_p6 }
  0x61   : > { %p330_p5 = pneg %p329_p4 }
  0x62   : > { %p336_p12 = por %p335_p11, %p334_p10 }
  0x64   : > { %p337_p13 = pnand %p336_p12, %p330_p5 }
  0x66   : > { %340 = shalt.err (!%p337_p13)
}
  0x67   : > { %232 = dma.vmem_to_hbm [thread:$0]  (%p449_p7), %s151_s7, 128, %s484_s6, %s137_s8  }
  0x68 PF: > { %p238_p0 = scmp.ge.s32.totalorder %s381_s21, 1  ;;  %s162_s16 = sand.u32 1, %s373_s19  }
  0x69   : > { %s163_s17 = scalar_lea.sflag [#allocation7], %s162_s16 }
  0x6a   : > { %p235_p1 = pnand %p238_p0, %p453_p9 }
  0x6c   : > { %368 = dma.done.wait (!%p235_p1), %s163_s17, 128  }
  0x6d   : > { %370 = vsyncadd (!%p235_p1), %s163_s17, 4294967168  ;;  %p16_p2 = scmp.ge.s32.totalorder %s438_s22, 3   ;;  %s526_s19 = smov %s377_s20 }
  0x6e   : > { %s527_s20 = smov %s447_s25  ;;  %s528_s21 = smov %s438_s22 }
  0x6f   :  { %18 = sbr.rel (!%p16_p2) target bundleno = 15 (0xf), region = 131 }
  0x76   :  { %168 = vsyncpa [#allocation7], 1 }
  0x77   :  { %170 = vsyncpa [#allocation7 + $0x1], 1 }
  0x78   :  { %171 = vsyncmov [#allocation3] }
  0x7b   :  { %s172_s21 = vpop.sfrf %171 }
  0x7c   :  { %p231_p7 = scmp.ne.s32.totalorder %s172_s21, 0 }
  0x7e   :  { %176 = shalt.err (%p231_p7)  }

</bundles_post_ra>
